<compile_context>
chip_gen: v7x
topology: tpu7x:2x2x1
jax: 0.10.0
libtpu: 0.0.40
codegen_flags: <defaults>
</compile_context>

<pallas_src>
import jax
import jax.numpy as jnp
from jax.experimental import pallas as pl
from jax.experimental.pallas import tpu as pltpu


def feature_attention_kernel(x_ref, w1_ref, b1_ref, w2_ref, b2_ref, o_ref):
    # Keep the storage dtype (bf16 goes straight to the MXU; f32 stays f32).
    x = x_ref[...]

    # Linear(C -> C//4) + ReLU, f32 accumulation on the MXU.
    h = jnp.dot(x, w1_ref[...], preferred_element_type=jnp.float32)
    h = jnp.maximum(h + b1_ref[...].astype(jnp.float32), 0.0)

    # Linear(C//4 -> C) + Sigmoid (f32 logits; sigmoid runs on the EUP).
    logits = jnp.dot(h.astype(w2_ref.dtype), w2_ref[...],
                     preferred_element_type=jnp.float32)
    gate = jax.nn.sigmoid(logits + b2_ref[...].astype(jnp.float32))

    if x.dtype == jnp.float32:
        # Exact f32 gate multiply, single cast at the store.
        o_ref[...] = (x * gate).astype(o_ref.dtype)
    else:
        # bf16/fp8 activations: gate multiply in the storage dtype halves the
        # epilogue working set / vreg pressure (v6e/v7x have bf16 VALU).
        o_ref[...] = (x * gate.astype(x.dtype)).astype(o_ref.dtype)


def _tpu_budget_and_cores():
    """(VMEM budget bytes, assume-two-TensorCores) with a safe fallback."""
    cap = None
    try:
        info = pltpu.get_tpu_info()
        for name in ("vmem_capacity_bytes", "vmem_bytes"):
            cap = getattr(info, name, None)
            if cap is not None:
                break
    except Exception:
        cap = None
    if cap is None:
        # Unknown generation: v7x-safe budget, assume 2 TCs (split is ~free
        # on single-TC chips, missing it halves throughput on v7x).
        return 48 << 20, True
    cap = int(cap)
    if cap >= (100 << 20):
        # v5e / v6e: 128 MiB VMEM, single TensorCore per chip.
        return 96 << 20, False
    # v7x: 64 MiB VMEM per TC, 2 TCs per chip. Leave headroom for compiler
    # internal scratch.
    return min(48 << 20, cap * 3 // 4), True


def _pick_pack_factor(B, C):
    """Pack k consecutive rows into one lane-dense row of width k*C so the
    output stores are unmasked (k*C a multiple of the 128-lane vreg width)."""
    if C % 128 == 0 or B <= 1:
        return 1
    best = 1
    for k in range(2, 129):
        if k * C > 1024:
            break
        if B % k or (k * C) % 128:
            continue
        best = k
        if k * C >= 512:          # wide enough; stop growing the weights
            break
    return best


def _pick_batch_tile(B, C, H, itemsize, weight_bytes, budget, two_cores):
    """Largest sublane-aligned batch tile that fits the VMEM budget
    (double-buffered x/out DMA tiles + f32 in-kernel intermediates +
    double-buffered resident weights)."""
    sub = max(8, 32 // itemsize)                  # 8 f32 / 16 bf16 / 32 int8
    per_row = (2 * 2 * C * itemsize              # x + out tiles, double-buffered
               + 3 * C * 4 + H * 4)              # f32 gate/product/temps + h
    avail = max(0, budget - 2 * weight_bytes)
    fits = max(sub, avail // per_row)
    tb = int(min(B, fits))
    if tb >= B:
        # Whole batch fits in one tile.
        if two_cores and B >= 2 * sub:
            # Keep >= 2 grid steps so both v7x TensorCores get work.
            half = -(-(B // 2) // sub) * sub
            return min(half, B), per_row
        return B, per_row
    if tb >= 128:
        tb = (tb // 128) * 128
    else:
        tb = max(sub, (tb // sub) * sub)
    return tb, per_row


def _build_call(B, C, H, out_dtype, tb, vmem_limit, donate):
    grid = (pl.cdiv(B, tb),)
    alias = {0: 0} if donate else {}
    return pl.pallas_call(
        feature_attention_kernel,
        out_shape=jax.ShapeDtypeStruct((B, C), out_dtype),
        grid_spec=pltpu.PrefetchScalarGridSpec(
            num_scalar_prefetch=0,
            grid=grid,
            in_specs=[
                pl.BlockSpec((tb, C), lambda i: (i, 0)),   # x tile (batch)
                pl.BlockSpec((C, H), lambda i: (0, 0)),    # W1 (resident)
                pl.BlockSpec((1, H), lambda i: (0, 0)),    # b1
                pl.BlockSpec((H, C), lambda i: (0, 0)),    # W2 (resident)
                pl.BlockSpec((1, C), lambda i: (0, 0)),    # b2
            ],
            out_specs=pl.BlockSpec((tb, C), lambda i: (i, 0)),
        ),
        input_output_aliases=alias,
        compiler_params=pltpu.CompilerParams(
            dimension_semantics=("parallel",),
            vmem_limit_bytes=vmem_limit,
        ),
    )


def feature_attention(x, w1, b1, w2, b2, *, donate=False):
    """x: [..., C]; w1: [C, H], b1: [1, H], w2: [H, C], b2: [1, C], H = C // 4.

    Set donate=True only when x's buffer is actually donated to the call;
    otherwise XLA would insert a defensive copy of x (extra HBM traffic)."""
    orig_shape = x.shape
    C = orig_shape[-1]
    H = w1.shape[1]
    x2 = x.reshape(-1, C)                 # fold all leading dims into the batch
    B = x2.shape[0]

    # Lane-pack small feature dims: (B, C) -> (B/k, k*C) with block-diagonal
    # weights kron(I_k, W) and k-tiled biases.  Bit-exact (extra terms are 0).
    k = _pick_pack_factor(B, C)
    if k > 1:
        x2 = x2.reshape(B // k, k * C)
        eye = jnp.eye(k, dtype=w1.dtype)
        w1p = jnp.kron(eye, w1)                       # (k*C, k*H)
        w2p = jnp.kron(eye, w2)                       # (k*H, k*C)
        b1p = jnp.tile(b1, (1, k))                    # (1, k*H)
        b2p = jnp.tile(b2, (1, k))                    # (1, k*C)
    else:
        w1p, b1p, w2p, b2p = w1, b1, w2, b2
    Bp, Cp = x2.shape
    Hp = w1p.shape[1]

    x_itemsize = x2.dtype.itemsize
    w_itemsize = w1p.dtype.itemsize
    weight_bytes = (Cp * Hp + Hp + Hp * Cp + Cp) * w_itemsize

    budget, two_cores = _tpu_budget_and_cores()
    tb, per_row = _pick_batch_tile(Bp, Cp, Hp, x_itemsize, weight_bytes,
                                   budget, two_cores)

    vmem_need = 2 * weight_bytes + per_row * tb + (8 << 20)
    vmem_limit = int(min(max(vmem_need, 32 << 20), budget))

    out = _build_call(Bp, Cp, Hp, x2.dtype, tb, vmem_limit, donate)(
        x2, w1p, b1p, w2p, b2p)
    return out.reshape(orig_shape)


if __name__ == "__main__":
    batch, seq, C = 4, 128, 32        # small demo shapes; feature dim C=32
    H = C // 4                        # bottleneck width = 8

    key = jax.random.PRNGKey(0)
    kx, k1, k2, k3, k4 = jax.random.split(key, 5)

    x  = jax.random.normal(kx, (batch, seq, C), dtype=jnp.float32)
    w1 = jax.random.normal(k1, (C, H), dtype=jnp.float32) * 0.1
    b1 = jax.random.normal(k2, (1, H), dtype=jnp.float32) * 0.1
    w2 = jax.random.normal(k3, (H, C), dtype=jnp.float32) * 0.1
    b2 = jax.random.normal(k4, (1, C), dtype=jnp.float32) * 0.1

    out = feature_attention(x, w1, b1, w2, b2)   # donate defaults to False
    out = jax.block_until_ready(out)

    # Pure-JAX reference.
    h_ref = jnp.maximum(x @ w1 + b1, 0.0)
    ref = x * jax.nn.sigmoid(h_ref @ w2 + b2)

    assert out.shape == ref.shape and out.dtype == ref.dtype
    assert jnp.allclose(out, ref, atol=1e-5, rtol=1e-5), "mismatch vs reference"

    print("KERNEL_OK")
</pallas_src>

<mosaic_0001>
module attributes {stable_mosaic.version = 11 : i64} {
  func.func @feature_attention_kernel(%arg0: i32, %arg1: memref<16x512xf32, #tpu.memory_space<vmem>>, %arg2: memref<512x128xf32, #tpu.memory_space<vmem>>, %arg3: memref<1x128xf32, #tpu.memory_space<vmem>>, %arg4: memref<128x512xf32, #tpu.memory_space<vmem>>, %arg5: memref<1x512xf32, #tpu.memory_space<vmem>>, %arg6: memref<16x512xf32, #tpu.memory_space<vmem>>) attributes {dimension_semantics = [#tpu.dimension_semantics<parallel>], iteration_bounds = array<i64: 2>, scalar_prefetch = 0 : i64, scratch_operands = 0 : i64, tpu.core_type = #tpu.core_type<tc>, window_params = [{transform_indices = @transform_0, window_bounds = array<i64: 16, 512>}, {pipeline_mode = #tpu.pipeline_mode<synchronous>, transform_indices = @transform_1, window_bounds = array<i64: 512, 128>}, {pipeline_mode = #tpu.pipeline_mode<synchronous>, transform_indices = @transform_2, window_bounds = array<i64: 1, 128>}, {pipeline_mode = #tpu.pipeline_mode<synchronous>, transform_indices = @transform_3, window_bounds = array<i64: 128, 512>}, {pipeline_mode = #tpu.pipeline_mode<synchronous>, transform_indices = @transform_4, window_bounds = array<i64: 1, 512>}, {transform_indices = @transform_5, window_bounds = array<i64: 16, 512>}]} {
    %c0 = arith.constant 0 : index
    %c0_0 = arith.constant 0 : index
    %0 = vector.load %arg1[%c0, %c0_0] : memref<16x512xf32, #tpu.memory_space<vmem>>, vector<16x512xf32>
    %c0_1 = arith.constant 0 : index
    %c0_2 = arith.constant 0 : index
    %1 = vector.load %arg2[%c0_1, %c0_2] : memref<512x128xf32, #tpu.memory_space<vmem>>, vector<512x128xf32>
    %cst = arith.constant dense<0.000000e+00> : vector<16x128xf32>
    %2 = tpu.matmul %0, %1, %cst {dimension_numbers = #tpu.dot_dimension_numbers<[1], [0], [0], [1], [0, 0, 1, 1], [], []>} : vector<16x512xf32>, vector<512x128xf32>, vector<16x128xf32> -> vector<16x128xf32>
    %c0_3 = arith.constant 0 : index
    %c0_4 = arith.constant 0 : index
    %3 = vector.load %arg3[%c0_3, %c0_4] : memref<1x128xf32, #tpu.memory_space<vmem>>, vector<1x128xf32>
    %4 = vector.broadcast %3 : vector<1x128xf32> to vector<16x128xf32>
    %5 = arith.addf %2, %4 : vector<16x128xf32>
    %cst_5 = arith.constant 0.000000e+00 : f32
    %6 = vector.broadcast %cst_5 : f32 to vector<16x128xf32>
    %7 = arith.maximumf %5, %6 : vector<16x128xf32>
    %c0_6 = arith.constant 0 : index
    %c0_7 = arith.constant 0 : index
    %8 = vector.load %arg4[%c0_6, %c0_7] : memref<128x512xf32, #tpu.memory_space<vmem>>, vector<128x512xf32>
    %cst_8 = arith.constant dense<0.000000e+00> : vector<16x512xf32>
    %9 = tpu.matmul %7, %8, %cst_8 {dimension_numbers = #tpu.dot_dimension_numbers<[1], [0], [0], [1], [0, 0, 1, 1], [], []>} : vector<16x128xf32>, vector<128x512xf32>, vector<16x512xf32> -> vector<16x512xf32>
    %c0_9 = arith.constant 0 : index
    %c0_10 = arith.constant 0 : index
    %10 = vector.load %arg5[%c0_9, %c0_10] : memref<1x512xf32, #tpu.memory_space<vmem>>, vector<1x512xf32>
    %11 = vector.broadcast %10 : vector<1x512xf32> to vector<16x512xf32>
    %12 = arith.addf %9, %11 : vector<16x512xf32>
    %13 = arith.negf %12 : vector<16x512xf32>
    %14 = math.exp %13 : vector<16x512xf32>
    %cst_11 = arith.constant 1.000000e+00 : f32
    %15 = vector.broadcast %cst_11 : f32 to vector<16x512xf32>
    %16 = arith.addf %15, %14 : vector<16x512xf32>
    %17 = arith.divf %15, %16 : vector<16x512xf32>
    %18 = arith.mulf %0, %17 : vector<16x512xf32>
    %c0_12 = arith.constant 0 : index
    %c0_13 = arith.constant 0 : index
    %19 = vector.load %arg6[%c0_12, %c0_13] : memref<16x512xf32, #tpu.memory_space<vmem>>, vector<16x512xf32>
    tpu.vector_store %arg6[%c0_12, %c0_13], %18 {strides = array<i32>} : memref<16x512xf32, #tpu.memory_space<vmem>>, vector<16x512xf32>,
    return
  }
  func.func @transform_0(%arg0: i32) -> (i32, i32) {
    %c0_i32 = arith.constant 0 : i32
    %c0_i32_0 = arith.constant 0 : i32
    return %arg0, %c0_i32 : i32, i32
  }
  func.func @transform_1(%arg0: i32) -> (i32, i32) {
    %c0_i32 = arith.constant 0 : i32
    %c0_i32_0 = arith.constant 0 : i32
    %c0_i32_1 = arith.constant 0 : i32
    return %c0_i32, %c0_i32_0 : i32, i32
  }
  func.func @transform_2(%arg0: i32) -> (i32, i32) {
    %c0_i32 = arith.constant 0 : i32
    %c0_i32_0 = arith.constant 0 : i32
    %c0_i32_1 = arith.constant 0 : i32
    return %c0_i32, %c0_i32_0 : i32, i32
  }
  func.func @transform_3(%arg0: i32) -> (i32, i32) {
    %c0_i32 = arith.constant 0 : i32
    %c0_i32_0 = arith.constant 0 : i32
    %c0_i32_1 = arith.constant 0 : i32
    return %c0_i32, %c0_i32_0 : i32, i32
  }
  func.func @transform_4(%arg0: i32) -> (i32, i32) {
    %c0_i32 = arith.constant 0 : i32
    %c0_i32_0 = arith.constant 0 : i32
    %c0_i32_1 = arith.constant 0 : i32
    return %c0_i32, %c0_i32_0 : i32, i32
  }
  func.func @transform_5(%arg0: i32) -> (i32, i32) {
    %c0_i32 = arith.constant 0 : i32
    %c0_i32_0 = arith.constant 0 : i32
    return %arg0, %c0_i32 : i32, i32
  }
}

</mosaic_0001>

<bundles_post_ra>
// kernel: tpu_custom_call.1
= control target key start
LH: loop header
LB: loop body
LE: loop exit
PB: predicated region body
PF: predicated region fallthrough
CT: control target
= control target key end

     0   :  { %10 = vsyncpa [#allocation3], 0  ;;  %s1751_s0 = inlined_call_operand.hbm [shape: f32[32,512], index: 0, kind: input, shape index: {}]   ;;  %s1752_s1 = inlined_call_operand.hbm [shape: f32[512,128], index: 1, kind: input, shape index: {}]   ;;  %s1753_s2 = inlined_call_operand.vmem [shape: f32[1,128], index: 2, kind: input, shape index: {}]   ;;  %s1754_s3 = inlined_call_operand.hbm [shape: f32[128,512], index: 3, kind: input, shape index: {}]   ;;  %s1755_s4 = inlined_call_operand.vmem [shape: f32[1,512], index: 4, kind: input, shape index: {}]   ;;  %s1756_s5 = inlined_call_operand.hbm [shape: f32[32,512], index: 5, kind: output, shape index: {}]  }
   0x1   :  { %12 = vsyncpa [#allocation3 + $0x1], 0 }
   0x2   :  { %13 = vsyncpa [#allocation6], 0 }
   0x3   :  { %14 = vsyncpa [#allocation4], 0 }
   0x4   :  { %16 = vsyncpa [#allocation4 + $0x1], 0  ;;  %s1459_s18 = smov 0   ;;  %s1461_s19 = smov 0  }
   0x5   :  { %s1463_s20 = smov 0   ;;  %s1465_s21 = smov 0  }
   0x6 LB: > { %s1480_s22 = sadd.s32 4294967295, %s1416_s21   ;;  %s917_s23 = sadd.s32 4294967294, %s1416_s21   ;;  %s1416_s21 = sphi %s1465_s21, %s1776_s21   ;;  %s1412_s20 = sphi %s1463_s20, %s1775_s20   ;;  %s1408_s19 = sphi %s1461_s19, %s1774_s19   ;;  %s1404_s18 = sphi %s1459_s18, %s1773_s18  }
   0x7   : > { %p42_p0 = scmp.ne.s32.totalorder %s1408_s19, %s1404_s18  ;;  %p1757_p1 = scmp.eq.s32.totalorder %s1480_s22, 0 }
   0x8   : > { %p156_p3 = scmp.eq.s32.totalorder %s917_s23, 1  ;;  %p918_p5 = scmp.ge.s32.totalorder %s1416_s21, 1 }
   0x9   : > { %p1489_p4 = por %p1757_p1, %p42_p0  ;;  %p163_p7 = scmp.lt.s32.totalorder %s1416_s21, 3 }
   0xa   : > { %p1494_p6 = por %p156_p3, %p42_p0  ;;  %s1418_s27 = smov [#allocation5]  }
   0xb   : > { %s1760_s24 = scalar_select %p1489_p4, 1, 0 }
   0xc   : > { %s1761_s25 = scalar_select %p1494_p6, 1, 0 }
   0xd   : > { %p1499_p8 = pnand %p918_p5, %p163_p7  ;;  %s175_s28 = sshll.u32 %s1418_s27, 4  ;;  %s1503_s28 = int_to_ptr.vmem [resolvable:$true] %s175_s28 }
   0xe   : > { %s1419_s30 = smov [#allocation7]   ;;  %s1260_s9 = scalar_lea.hbm %s1752_s1, 8192 }
   0xf   : > { %p1166_p9 = pneg %p1499_p8  ;;  %s191_s6 = sshll.u32 %s1419_s30, 4  ;;  %s1514_s6 = int_to_ptr.vmem [resolvable:$true] %s191_s6 }
  0x10   : > { %p1261_p12 = scmp.ne.s32.totalorder %s1752_s1, %s1260_s9  ;;  %p1267_p5 = scmp.lt.u32.totalorder %s1260_s9, %s1752_s1 }
  0x11   : > { %p1510_p11 = pnand %p1166_p9, %p1757_p1 }
  0x13   : > { %p1262_p13 = pneg %p1510_p11 }
  0x15   : > { %p1263_p0 = pnand %p1262_p13, %p1261_p12 }
  0x17   : > { %p1264_p3 = pneg %p1263_p0 }
  0x19   : > { %p1269_p7 = pnand %p1267_p5, %p1264_p3 }
  0x1b   : > { %1272 = shalt.err (!%p1269_p7)
}
  0x1c   : > { %s1273_s14 = scalar_lea.vmem %s1503_s28, 8192  ;;  %p1281_p2 = scmp.lt.s32.totalorder %s1503_s28, %s1503_s28 }
  0x1d   : > { %p1274_p9 = scmp.ne.s32.totalorder %s1503_s28, %s1273_s14  ;;  %p1282_p12 = scmp.lt.s32.totalorder %s1273_s14, %s1273_s14 }
  0x1f   : > { %p1276_p10 = pnand %p1274_p9, %p1262_p13  ;;  %p1283_p0 = por %p1282_p12, %p1281_p2 }
  0x21   : > { %p1277_p1 = pneg %p1276_p10 }
  0x23   : > { %p1284_p6 = pnand %p1283_p0, %p1277_p1 }
  0x25   : > { %1287 = shalt.err (!%p1284_p6)
}
  0x26   : > { %s1420_s15 = smov 128   ;;  %s1421_s16 = smov 8  }
  0x27   : > { %1169 = dma.hbm_to_vmem [thread:$0]  (!%p1510_p11), %s1752_s1, 8192, %s1503_s28, [#allocation6], %s1420_s15, %s1420_s15, %s1421_s16  }
  0x28   : > { %s1288_s7 = scalar_lea.hbm %s1754_s3, 8192 }
  0x29   : > { %p1289_p2 = scmp.ne.s32.totalorder %s1754_s3, %s1288_s7  ;;  %p1295_p10 = scmp.lt.u32.totalorder %s1288_s7, %s1754_s3 }
  0x2b   : > { %p1291_p1 = pnand %p1289_p2, %p1262_p13 }
  0x2d   : > { %p1292_p6 = pneg %p1291_p1 }
  0x2f   : > { %p1297_p3 = pnand %p1295_p10, %p1292_p6 }
  0x31   : > { %1300 = shalt.err (!%p1297_p3)
}
  0x32   : > { %s1301_s28 = scalar_lea.vmem %s1514_s6, 8192  ;;  %p1309_p12 = scmp.lt.s32.totalorder %s1514_s6, %s1514_s6 }
  0x33   : > { %p1302_p5 = scmp.ne.s32.totalorder %s1514_s6, %s1301_s28  ;;  %p1310_p0 = scmp.lt.s32.totalorder %s1301_s28, %s1301_s28 }
  0x35   : > { %p1304_p7 = pnand %p1302_p5, %p1262_p13  ;;  %p1311_p2 = por %p1310_p0, %p1309_p12 }
  0x37   : > { %p1305_p9 = pneg %p1304_p7 }
  0x39   : > { %p1312_p1 = pnand %p1311_p2, %p1305_p9 }
  0x3b   : > { %1315 = shalt.err (!%p1312_p1)
}
  0x3c   : > { %s1422_s12 = smov 512   ;;  %s1423_s13 = smov 32  }
  0x3d   : > { %1172 = dma.hbm_to_vmem [thread:$0]  (!%p1510_p11), %s1754_s3, 8192, %s1514_s6, [#allocation6], %s1422_s12, %s1422_s12, %s1423_s13  }
  0x3e   : > { %s1572_s16 = sadd.s32 1, %s1416_s21   ;;  %s29_s23 = sadd.s32 1, %s1412_s20 }
  0x3f   : > { %s26_s17 = ssub.s32 %s1416_s21, %s1572_s16  ;;  %p36_p6 = scmp.ne.s32.totalorder %s1412_s20, %s1408_s19 }
  0x40   : > { %p27_p13 = scmp.eq.s32.totalorder %s26_s17, 0  ;;  %p37_p10 = scmp.eq.s32.totalorder %s1416_s21, 0 }
  0x41   : > { %p1764_p5 = scmp.eq.s32.totalorder %s1480_s22, 1  ;;  %p1183_p9 = scmp.lt.s32.totalorder %s1416_s21, 2 }
  0x42   : > { %s1581_s27 = scalar_select %p27_p13, %s1412_s20, %s29_s23  }
  0x43   : > { %p38_p3 = por %p37_p10, %p36_p6  ;;  %p1585_p7 = por %p1764_p5, %p36_p6 }
  0x44   : > { %s208_s30 = sand.u32 1, %s1412_s20   ;;  %s947_s6 = sshll.u32 %s1416_s21, 10 }
  0x45   : > { %s1765_s29 = scalar_select %p1585_p7, 1, 0 }
  0x46   : > { %s922_s7 = sshll.u32 %s208_s30, 6  ;;  %s1595_s10 = scalar_lea.hbm %s1751_s0, %s947_s6 }
  0x47   : > { %s212_s11 = scalar_lea.vmem [#allocation2], %s922_s7  ;;  %p1599_p11 = pnand %p1183_p9, %p38_p3 }
  0x48   : > { %s220_s28 = sshll.u32 %s212_s11, 4  ;;  %s1603_s15 = scalar_lea.sflag [#allocation3], %s208_s30  ;;  %s1597_s28 = int_to_ptr.vmem [resolvable:$true] %s220_s28 }
  0x49   : > { %s1316_s17 = scalar_lea.hbm %s1595_s10, 1024  ;;  %p1318_p0 = pneg %p1599_p11 }
  0x4a   : > { %p1317_p12 = scmp.ne.s32.totalorder %s1595_s10, %s1316_s17  ;;  %s1321_s6 = scalar_lea.hbm %s1751_s0, 2048 }
  0x4b   : > { %p1322_p13 = scmp.lt.u32.totalorder %s1595_s10, %s1751_s0  ;;  %p1323_p6 = scmp.lt.u32.totalorder %s1321_s6, %s1316_s17 }
  0x4c   : > { %p1319_p2 = pnand %p1318_p0, %p1317_p12  ;;  %p1325_p3 = scmp.lt.u32.totalorder %s1316_s17, %s1595_s10 }
  0x4d   : > { %p1324_p10 = por %p1323_p6, %p1322_p13 }
  0x4e   : > { %p1320_p1 = pneg %p1319_p2 }
  0x4f   : > { %p1326_p5 = por %p1325_p3, %p1324_p10 }
  0x51   : > { %p1327_p9 = pnand %p1326_p5, %p1320_p1 }
  0x53   : > { %1330 = shalt.err (!%p1327_p9)
}
  0x54   : > { %s1331_s30 = scalar_lea.vmem %s1597_s28, 1024  ;;  %s1424_s11 = smov [#allocation2]  }
  0x55   : > { %p1332_p12 = scmp.ne.s32.totalorder %s1597_s28, %s1331_s30  ;;  %s1336_s23 = sshll.u32 %s1424_s11, 4  ;;  %s1337_s23 = int_to_ptr.vmem [resolvable:$false] %s1336_s23 }
  0x56   : > { %s1338_s7 = scalar_lea.vmem %s1337_s23, 2048  ;;  %p1339_p4 = scmp.lt.s32.totalorder %s1597_s28, %s1337_s23 }
  0x57   : > { %p1334_p2 = pnand %p1332_p12, %p1318_p0  ;;  %p1340_p13 = scmp.lt.s32.totalorder %s1338_s7, %s1331_s30 }
  0x59   : > { %p1335_p7 = pneg %p1334_p2  ;;  %p1341_p6 = por %p1340_p13, %p1339_p4 }
  0x5b   : > { %p1342_p10 = pnand %p1341_p6, %p1335_p7 }
  0x5d   : > { %1345 = shalt.err (!%p1342_p10)
}
  0x5e   : > { %1176 = dma.hbm_to_vmem [thread:$0]  (!%p1599_p11), %s1595_s10, 1024, %s1597_s28, %s1603_s15, %s1422_s12, %s1422_s12, %s1423_s13  }
  0x5f   : > { %232 = sbr.rel (%p1499_p8) target bundleno = 626 (0x272), region = 40  ;;  %s1637_s17 = sand.u32 (!%p1499_p8), 1, %s1408_s19  }
  0x60   : > { %s927_s6 = sshll.u32 (!%p1499_p8), %s1637_s17, 6  ;;  %s235_s8 = scalar_lea.sflag (!%p1499_p8), [#allocation3], %s1637_s17 }
  0x61   : > { %s1643_s14 = scalar_lea.vmem (!%p1499_p8), [#allocation2], %s927_s6  ;;  %p1767_p4 = scmp.ne.s32.totalorder (!%p1499_p8), %s1760_s24, 0 }
  0x66   : > { %1391 = dma.done.wait (%p1767_p4), %s235_s8, 1024  }
  0x67   : > { %1393 = vsyncadd (%p1767_p4), %s235_s8, 4294966272  ;;  %p1768_p7 = scmp.eq.s32.totalorder %s1480_s22, 0 }
  0x69   : > { %1395 = dma.done.wait (%p1768_p7), [#allocation6], 16384   ;;  %p1769_p8 = pmov %p1768_p7 }
  0x6a   : > { %v299_v0 = vld [vmem:[#allocation5 + $0x80] sm:$0xff]  ;;  %v300_v1 = vld [vmem:[#allocation5 + $0x88] sm:$0xff]  ;;  %v301_v11 = vld [vmem:[#allocation5 + $0x90] sm:$0xff]  ;;  %s272_s10 = scalar_lea.vmem [#allocation8], %s927_s6  ;;  %s949_s28 = sshll.u32 %s1480_s22, 10 }
  0x6b   : > { %1397 = vsyncadd (%p1769_p8), [#allocation6], 4294950912  ;;  %v283_v2 = vld [vmem:[#allocation5] sm:$0xff]  ;;  %v1026_v3 = vpack.c.bf16 %v300_v1, %v299_v0  ;;  %v284_v4 = vld [vmem:[#allocation5 + $0x8] sm:$0xff]  ;;  %s825_s15 = sshll.u32 %s272_s10, 4  ;;  %s1704_s11 = scalar_lea.hbm %s1756_s5, %s949_s28  ;;  %s1706_s15 = int_to_ptr.vmem [resolvable:$true] %s825_s15 }
  0x6c   : > { %v331_v5 = vld [vmem:[#allocation5 + $0x180] sm:$0xff]  ;;  %v332_v6 = vld [vmem:[#allocation5 + $0x188] sm:$0xff]  ;;  %v1028_v7 = vpack.c.bf16 %v284_v4, %v283_v2  ;;  %v302_v13 = vld [vmem:[#allocation5 + $0x98] sm:$0xff]  ;;  %s811_s22 = scalar_lea.sflag [#allocation4], %s1637_s17  ;;  %s1346_s23 = scalar_lea.vmem %s1706_s15, 1024 }
  0x6d   : > { %v1058_v8 = vpack.c.bf16 %v332_v6, %v331_v5  ;;  %v315_v9 = vld [vmem:[#allocation5 + $0x100] sm:$0xff]  ;;  %v316_v10 = vld [vmem:[#allocation5 + $0x108] sm:$0xff]  ;;  %1027 = vmatprep.subr.bf16.mxu0 %v1026_v3  ;;  %v285_v14 = vld [vmem:[#allocation5 + $0x10] sm:$0xff]  ;;  %v1030_v16 = vpack.c.bf16 %v302_v13, %v301_v11  ;;  %p1347_p11 = scmp.ne.s32.totalorder %s1706_s15, %s1346_s23  ;;  %p1770_p0 = scmp.ne.s32.totalorder %s1765_s29, 0 }
  0x6e   : > { %v1060_v12 = vpack.c.bf16 %v316_v10, %v315_v9  ;;  %v286_v15 = vld [vmem:[#allocation5 + $0x18] sm:$0xff]  ;;  %1029 = vmatpush3.bf16.msra.mxu0 %v1028_v7  ;;  %v333_v18 = vld [vmem:[#allocation5 + $0x190] sm:$0xff]  ;;  %v303_v23 = vld [vmem:[#allocation5 + $0xa0] sm:$0xff]  ;;  %s1426_s7 = smov [#allocation8]  }
  0x6f   : > { %1059 = vmatprep.subr.bf16.mxu1 %v1058_v8  ;;  %v1032_v17 = vpack.c.bf16 %v286_v15, %v285_v14  ;;  %v334_v19 = vld [vmem:[#allocation5 + $0x198] sm:$0xff]  ;;  %v317_v20 = vld [vmem:[#allocation5 + $0x110] sm:$0xff]  ;;  %v304_v24 = vld [vmem:[#allocation5 + $0xa8] sm:$0xff]  ;;  %1031 = vmatprep.subr.bf16.mxu0 %v1030_v16  ;;  %p1348_p1 = pnand %p1347_p11, %p1770_p0  ;;  %s1350_s6 = sshll.u32 %s1426_s7, 4  ;;  %s1351_s6 = int_to_ptr.vmem [resolvable:$false] %s1350_s6 }
  0x70   : > { %1061 = vmatpush3.bf16.msra.mxu1 %v1060_v12  ;;  %v1062_v21 = vpack.c.bf16 %v334_v19, %v333_v18  ;;  %v318_v22 = vld [vmem:[#allocation5 + $0x118] sm:$0xff]  ;;  %v1034_v26 = vpack.c.bf16 %v304_v24, %v303_v23  ;;  %v287_v27 = vld [vmem:[#allocation5 + $0x20] sm:$0xff]  ;;  %v288_v28 = vld [vmem:[#allocation5 + $0x28] sm:$0xff]  ;;  %s1352_s8 = scalar_lea.vmem %s1351_s6, 2048  ;;  %p1353_p5 = scmp.lt.s32.totalorder %s1706_s15, %s1351_s6 }
  0x71   : > { %v1064_v25 = vpack.c.bf16 %v318_v22, %v317_v20  ;;  %v335_v29 = vld [vmem:[#allocation5 + $0x1a0] sm:$0xff]  ;;  %v336_v30 = vld [vmem:[#allocation5 + $0x1a8] sm:$0xff]  ;;  %v1036_v33 = vpack.c.bf16 %v288_v28, %v287_v27  ;;  %v305_v35 = vld [vmem:[#allocation5 + $0xb0] sm:$0xff]  ;;  %p1349_p3 = pneg %p1348_p1  ;;  %p1354_p9 = scmp.lt.s32.totalorder %s1352_s8, %s1346_s23 }
  0x72   : > { %1063 = vmatprep.subr.bf16.mxu1 %v1062_v21  ;;  %v319_v31 = vld [vmem:[#allocation5 + $0x120] sm:$0xff]  ;;  %v320_v32 = vld [vmem:[#allocation5 + $0x128] sm:$0xff]  ;;  %1033 = vmatpush3.bf16.msra.mxu0 %v1032_v17  ;;  %v1066_v34 = vpack.c.bf16 %v336_v30, %v335_v29  ;;  %v306_v36 = vld [vmem:[#allocation5 + $0xb8] sm:$0xff] }
  0x73   : > { %v289_v37 = vld [vmem:[#allocation5 + $0x30] sm:$0xff]  ;;  %1035 = vmatprep.subr.bf16.mxu0 %v1034_v26  ;;  %v1068_v38 = vpack.c.bf16 %v320_v32, %v319_v31  ;;  %v1038_v39 = vpack.c.bf16 %v306_v36, %v305_v35  ;;  %v290_v40 = vld [vmem:[#allocation5 + $0x38] sm:$0xff]  ;;  %v307_v46 = vld [vmem:[#allocation5 + $0xc0] sm:$0xff]  ;;  %p1355_p12 = por %p1354_p9, %p1353_p5 }
  0x74   : > { %1065 = vmatpush3.bf16.msra.mxu1 %v1064_v25  ;;  %v337_v41 = vld [vmem:[#allocation5 + $0x1b0] sm:$0xff]  ;;  %v338_v42 = vld [vmem:[#allocation5 + $0x1b8] sm:$0xff]  ;;  %v308_v47 = vld [vmem:[#allocation5 + $0xc8] sm:$0xff]  ;;  %v1040_v48 = vpack.c.bf16 %v290_v40, %v289_v37 }
  0x75   : > { %1067 = vmatprep.subr.bf16.mxu1 %v1066_v34  ;;  %v1070_v43 = vpack.c.bf16 %v338_v42, %v337_v41  ;;  %v321_v44 = vld [vmem:[#allocation5 + $0x130] sm:$0xff]  ;;  %v322_v45 = vld [vmem:[#allocation5 + $0x138] sm:$0xff]  ;;  %v339_v49 = vld [vmem:[#allocation5 + $0x1c0] sm:$0xff]  ;;  %v1042_v52 = vpack.c.bf16 %v308_v47, %v307_v46  ;;  %p1356_p2 = pnand %p1355_p12, %p1349_p3 }
  0x76   : > { %1037 = vmatpush3.bf16.msra.mxu0 %v1036_v33  ;;  %v340_v50 = vld [vmem:[#allocation5 + $0x1c8] sm:$0xff]  ;;  %v1072_v51 = vpack.c.bf16 %v322_v45, %v321_v44  ;;  %v291_v53 = vld [vmem:[#allocation5 + $0x40] sm:$0xff]  ;;  %v309_v58 = vld [vmem:[#allocation5 + $0xd0] sm:$0xff] }
  0x77   : > { %1039 = vmatprep.subr.bf16.mxu0 %v1038_v39  ;;  %v292_v54 = vld [vmem:[#allocation5 + $0x48] sm:$0xff]  ;;  %v323_v55 = vld [vmem:[#allocation5 + $0x140] sm:$0xff]  ;;  %v1074_v56 = vpack.c.bf16 %v340_v50, %v339_v49  ;;  %v310_v59 = vld [vmem:[#allocation5 + $0xd8] sm:$0xff] }
  0x78   : > { %1069 = vmatpush3.bf16.msra.mxu1 %v1068_v38  ;;  %v324_v57 = vld [vmem:[#allocation5 + $0x148] sm:$0xff]  ;;  %v341_v60 = vld [vmem:[#allocation5 + $0x1d0] sm:$0xff]  ;;  %v342_v61 = vld [vmem:[#allocation5 + $0x1d8] sm:$0xff]  ;;  %v1044_v62 = vpack.c.bf16 %v292_v54, %v291_v53  ;;  %v1046_v0 = vpack.c.bf16 %v310_v59, %v309_v58 }
  0x79   : > { %1071 = vmatprep.subr.bf16.mxu1 %v1070_v43  ;;  %v1076_v63 = vpack.c.bf16 %v324_v57, %v323_v55  ;;  %v293_v1 = vld [vmem:[#allocation5 + $0x50] sm:$0xff]  ;;  %v294_v2 = vld [vmem:[#allocation5 + $0x58] sm:$0xff]  ;;  %v1078_v4 = vpack.c.bf16 %v342_v61, %v341_v60  ;;  %v311_v6 = vld [vmem:[#allocation5 + $0xe0] sm:$0xff] }
  0x7a   : > { %1041 = vmatpush3.bf16.msra.mxu0 %v1040_v48  ;;  %v325_v3 = vld [vmem:[#allocation5 + $0x150] sm:$0xff]  ;;  %v326_v5 = vld [vmem:[#allocation5 + $0x158] sm:$0xff]  ;;  %v312_v7 = vld [vmem:[#allocation5 + $0xe8] sm:$0xff]  ;;  %v1048_v10 = vpack.c.bf16 %v294_v2, %v293_v1 }
  0x7b   : > { %1043 = vmatprep.subr.bf16.mxu0 %v1042_v52  ;;  %v343_v8 = vld [vmem:[#allocation5 + $0x1e0] sm:$0xff]  ;;  %v344_v9 = vld [vmem:[#allocation5 + $0x1e8] sm:$0xff]  ;;  %v1080_v13 = vpack.c.bf16 %v326_v5, %v325_v3  ;;  %v1050_v14 = vpack.c.bf16 %v312_v7, %v311_v6  ;;  %v313_v19 = vld [vmem:[#allocation5 + $0xf0] sm:$0xff] }
  0x7c   : > { %1073 = vmatpush3.bf16.msra.mxu1 %v1072_v51  ;;  %v295_v11 = vld [vmem:[#allocation5 + $0x60] sm:$0xff]  ;;  %v296_v12 = vld [vmem:[#allocation5 + $0x68] sm:$0xff]  ;;  %v1082_v18 = vpack.c.bf16 %v344_v9, %v343_v8  ;;  %v314_v20 = vld [vmem:[#allocation5 + $0xf8] sm:$0xff] }
  0x7d   : > { %1075 = vmatprep.subr.bf16.mxu1 %v1074_v56  ;;  %v327_v15 = vld [vmem:[#allocation5 + $0x160] sm:$0xff]  ;;  %v328_v16 = vld [vmem:[#allocation5 + $0x168] sm:$0xff]  ;;  %v1658_v21 = vld [vmem:[%s1643_s14 + $0x18] sm:$0xff]  ;;  %v1052_v24 = vpack.c.bf16 %v296_v12, %v295_v11  ;;  %v1054_v26 = vpack.c.bf16 %v314_v20, %v313_v19 }
  0x7e   : > { %1045 = vmatpush3.bf16.msra.mxu0 %v1044_v62  ;;  %v1654_v17 = vld [vmem:[%s1643_s14 + $0x8] sm:$0xff]  ;;  %v345_v22 = vld [vmem:[#allocation5 + $0x1f0] sm:$0xff]  ;;  %v346_v23 = vld [vmem:[#allocation5 + $0x1f8] sm:$0xff]  ;;  %493 = vmatprep.mubr.f32.mxu1 %v1658_v21  ;;  %v1084_v25 = vpack.c.bf16 %v328_v16, %v327_v15 }
  0x7f   : > { %1047 = vmatprep.subr.bf16.mxu0 %v1046_v0  ;;  %418 = vmatprep.mubr.f32.mxu0 %v1654_v17  ;;  %v297_v27 = vld [vmem:[#allocation5 + $0x70] sm:$0xff]  ;;  %v298_v28 = vld [vmem:[#allocation5 + $0x78] sm:$0xff]  ;;  %v1086_v30 = vpack.c.bf16 %v346_v23, %v345_v22  ;;  %v507_v32 = vld [vmem:[#allocation7 + $0x8] sm:$0xff] }
  0x80   : > { %1077 = vmatpush3.bf16.msra.mxu1 %v1076_v63  ;;  %v329_v29 = vld [vmem:[#allocation5 + $0x170] sm:$0xff]  ;;  %v330_v31 = vld [vmem:[#allocation5 + $0x178] sm:$0xff]  ;;  %v511_v33 = vld [vmem:[#allocation7 + $0x28] sm:$0xff]  ;;  %v1056_v36 = vpack.c.bf16 %v298_v28, %v297_v27 }
  0x81   : > { %1079 = vmatprep.subr.bf16.mxu1 %v1078_v4  ;;  %v509_v34 = vld [vmem:[#allocation7 + $0x18] sm:$0xff]  ;;  %v1088_v37 = vpack.c.bf16 %v330_v31, %v329_v29  ;;  %v1090_v38 = vpack.c.bf16 %v511_v33, %v507_v32  ;;  %v506_v40 = vld [vmem:[#allocation7] sm:$0xff]  ;;  %v508_v42 = vld [vmem:[#allocation7 + $0x10] sm:$0xff] }
  0x82   : > { %1049 = vmatpush3.bf16.msra.mxu0 %v1048_v10  ;;  %v513_v35 = vld [vmem:[#allocation7 + $0x38] sm:$0xff]  ;;  %v510_v41 = vld [vmem:[#allocation7 + $0x20] sm:$0xff]  ;;  %v512_v43 = vld [vmem:[#allocation7 + $0x30] sm:$0xff] }
  0x83   : > { %1051 = vmatprep.subr.bf16.mxu0 %v1050_v14  ;;  %v1122_v39 = vpack.c.bf16 %v513_v35, %v509_v34  ;;  %v515_v44 = vld [vmem:[#allocation7 + $0x48] sm:$0xff]  ;;  %v1662_v46 = vld [vmem:[%s1643_s14] sm:$0xff]  ;;  %v517_v47 = vld [vmem:[#allocation7 + $0x58] sm:$0xff]  ;;  %v1092_v52 = vpack.c.bf16 %v510_v41, %v506_v40  ;;  %v1124_v53 = vpack.c.bf16 %v512_v43, %v508_v42 }
  0x84   : > { %1081 = vmatpush3.bf16.msra.mxu1 %v1080_v13  ;;  %v519_v45 = vld [vmem:[#allocation7 + $0x68] sm:$0xff]  ;;  %v521_v48 = vld [vmem:[#allocation7 + $0x78] sm:$0xff]  ;;  %v1665_v49 = vld [vmem:[%s1643_s14 + $0x10] sm:$0xff] }
  0x85   : > { %1083 = vmatprep.subr.bf16.mxu1 %v1082_v18  ;;  %v1668_v50 = vld [vmem:[%s1643_s14 + $0x28] sm:$0xff]  ;;  %v1671_v51 = vld [vmem:[%s1643_s14 + $0x38] sm:$0xff]  ;;  %v1094_v54 = vpack.c.bf16 %v519_v45, %v515_v44  ;;  %v514_v55 = vld [vmem:[#allocation7 + $0x40] sm:$0xff]  ;;  %v1126_v58 = vpack.c.bf16 %v521_v48, %v517_v47 }
  0x86   : > { %1053 = vmatpush3.bf16.msra.mxu0 %v1052_v24  ;;  %v518_v56 = vld [vmem:[#allocation7 + $0x60] sm:$0xff]  ;;  %v516_v57 = vld [vmem:[#allocation7 + $0x50] sm:$0xff]  ;;  %v523_v60 = vld [vmem:[#allocation7 + $0x88] sm:$0xff] }
  0x87   : > { %1055 = vmatprep.subr.bf16.mxu0 %v1054_v26  ;;  %v520_v59 = vld [vmem:[#allocation7 + $0x70] sm:$0xff]  ;;  %v527_v61 = vld [vmem:[#allocation7 + $0xa8] sm:$0xff]  ;;  %v1677_v62 = vld [vmem:[%s1643_s14 + $0x20] sm:$0xff]  ;;  %v1096_v2 = vpack.c.bf16 %v518_v56, %v514_v55 }
  0x88   : > { %1085 = vmatpush3.bf16.msra.mxu1 %v1084_v25  ;;  %v525_v63 = vld [vmem:[#allocation7 + $0x98] sm:$0xff]  ;;  %v1681_v1 = vld [vmem:[%s1643_s14 + $0x30] sm:$0xff]  ;;  %v1128_v3 = vpack.c.bf16 %v520_v59, %v516_v57  ;;  %v1098_v4 = vpack.c.bf16 %v527_v61, %v523_v60  ;;  %v522_v5 = vld [vmem:[#allocation7 + $0x80] sm:$0xff] }
  0x89   : > { %1087 = vmatprep.subr.bf16.mxu1 %v1086_v30  ;;  %v529_v0 = vld [vmem:[#allocation7 + $0xb8] sm:$0xff]  ;;  %v526_v6 = vld [vmem:[#allocation7 + $0xa0] sm:$0xff]  ;;  %v524_v7 = vld [vmem:[#allocation7 + $0x90] sm:$0xff] }
  0x8a   : > { %1057 = vmatpush3.bf16.msra.mxu0 %v1056_v36  ;;  %v1130_v8 = vpack.c.bf16 %v529_v0, %v525_v63  ;;  %v528_v9 = vld [vmem:[#allocation7 + $0xb0] sm:$0xff]  ;;  %v531_v10 = vld [vmem:[#allocation7 + $0xc8] sm:$0xff]  ;;  %v533_v12 = vld [vmem:[#allocation7 + $0xd8] sm:$0xff]  ;;  %v1100_v14 = vpack.c.bf16 %v526_v6, %v522_v5 }
  0x8b   : > { %1091 = vmatprep.subr.bf16.mxu0 %v1090_v38  ;;  %v535_v11 = vld [vmem:[#allocation7 + $0xe8] sm:$0xff]  ;;  %v537_v13 = vld [vmem:[#allocation7 + $0xf8] sm:$0xff]  ;;  %v1132_v15 = vpack.c.bf16 %v528_v9, %v524_v7  ;;  %v530_v18 = vld [vmem:[#allocation7 + $0xc0] sm:$0xff] }
  0x8c   : > { %1089 = vmatpush3.bf16.msra.mxu1 %v1088_v37  ;;  %v1102_v16 = vpack.c.bf16 %v535_v11, %v531_v10  ;;  %v534_v19 = vld [vmem:[#allocation7 + $0xe0] sm:$0xff]  ;;  %v532_v20 = vld [vmem:[#allocation7 + $0xd0] sm:$0xff]  ;;  %v1134_v22 = vpack.c.bf16 %v537_v13, %v533_v12  ;;  %v539_v24 = vld [vmem:[#allocation7 + $0x108] sm:$0xff] }
  0x8d   : > { %1123 = vmatprep.subr.bf16.mxu1 %v1122_v39  ;;  %419 = vmatmul.mubr.f32.vlgmr.msra.gmra.mrb[0].mxu0 %v1662_v46  ;;  %v536_v23 = vld [vmem:[#allocation7 + $0xf0] sm:$0xff]  ;;  %v543_v25 = vld [vmem:[#allocation7 + $0x128] sm:$0xff]  ;;  %v541_v26 = vld [vmem:[#allocation7 + $0x118] sm:$0xff]  ;;  %v1104_v28 = vpack.c.bf16 %v534_v19, %v530_v18 }
  0x8e   : > { %423 = vmatprep.mubr.f32.mxu0 %v1668_v50  ;;  %1093 = vmatpush1.bf16.msra.mxu0 %v1092_v52  ;;  %v545_v27 = vld [vmem:[#allocation7 + $0x138] sm:$0xff]  ;;  %v1136_v29 = vpack.c.bf16 %v536_v23, %v532_v20  ;;  %v1106_v30 = vpack.c.bf16 %v543_v25, %v539_v24  ;;  %v538_v31 = vld [vmem:[#allocation7 + $0x100] sm:$0xff]  ;;  %v540_v33 = vld [vmem:[#allocation7 + $0x110] sm:$0xff] }
  0x8f   : > { %494 = vmatmul.mubr.f32.vlgmr.msra.gmra.mrb[0].mxu1 %v1665_v49  ;;  %1095 = vmatprep.subr.bf16.mxu0 %v1094_v54  ;;  %v542_v32 = vld [vmem:[#allocation7 + $0x120] sm:$0xff]  ;;  %v1138_v34 = vpack.c.bf16 %v545_v27, %v541_v26  ;;  %v544_v35 = vld [vmem:[#allocation7 + $0x130] sm:$0xff]  ;;  %v547_v36 = vld [vmem:[#allocation7 + $0x148] sm:$0xff] }
  0x90   : > { %498 = vmatprep.mubr.f32.mxu1 %v1671_v51  ;;  %1125 = vmatpush1.bf16.msra.mxu1 %v1124_v53  ;;  %v551_v37 = vld [vmem:[#allocation7 + $0x168] sm:$0xff]  ;;  %v549_v38 = vld [vmem:[#allocation7 + $0x158] sm:$0xff]  ;;  %v1108_v40 = vpack.c.bf16 %v542_v32, %v538_v31  ;;  %v1140_v41 = vpack.c.bf16 %v544_v35, %v540_v33  ;;  %v546_v43 = vld [vmem:[#allocation7 + $0x140] sm:$0xff] }
  0x91   : > { %424 = vmatmul.mubr.f32.gmra.mrb[2].mxu0 %v1677_v62  ;;  %1127 = vmatprep.subr.bf16.mxu1 %v1126_v58  ;;  %v553_v39 = vld [vmem:[#allocation7 + $0x178] sm:$0xff]  ;;  %v1110_v42 = vpack.c.bf16 %v551_v37, %v547_v36  ;;  %v550_v44 = vld [vmem:[#allocation7 + $0x160] sm:$0xff]  ;;  %v548_v47 = vld [vmem:[#allocation7 + $0x150] sm:$0xff] }
  0x92   : > { %1097 = vmatpush1.bf16.msra.mxu0 %v1096_v2  ;;  %v1142_v45 = vpack.c.bf16 %v553_v39, %v549_v38  ;;  %v552_v48 = vld [vmem:[#allocation7 + $0x170] sm:$0xff]  ;;  %v1112_v52 = vpack.c.bf16 %v550_v44, %v546_v43  ;;  %v555_v54 = vld [vmem:[#allocation7 + $0x188] sm:$0xff]  ;;  %v557_v56 = vld [vmem:[#allocation7 + $0x198] sm:$0xff]  ;;  %v572_v38 = vlaneseq }
  0x93   : > { %499 = vmatmul.mubr.f32.gmra.mrb[2].mxu1 %v1681_v1  ;;  %1099 = vmatprep.subr.bf16.mxu0 %v1098_v4  ;;  %v1144_v53 = vpack.c.bf16 %v552_v48, %v548_v47  ;;  %v559_v55 = vld [vmem:[#allocation7 + $0x1a8] sm:$0xff]  ;;  %v561_v58 = vld [vmem:[#allocation7 + $0x1b8] sm:$0xff]  ;;  %v554_v59 = vld [vmem:[#allocation7 + $0x180] sm:$0xff] }
  0x94   : > { %1129 = vmatpush1.bf16.msra.mxu1 %v1128_v3  ;;  %v1114_v57 = vpack.c.bf16 %v559_v55, %v555_v54  ;;  %v1146_v60 = vpack.c.bf16 %v561_v58, %v557_v56  ;;  %v558_v61 = vld [vmem:[#allocation7 + $0x1a0] sm:$0xff]  ;;  %v556_v63 = vld [vmem:[#allocation7 + $0x190] sm:$0xff]  ;;  %v563_v4 = vld [vmem:[#allocation7 + $0x1c8] sm:$0xff]  ;;  %v573_v39 = vshrl.u32 %v572_v38, 7 }
  0x95   : > { %1131 = vmatprep.subr.bf16.mxu1 %v1130_v8  ;;  %v560_v0 = vld [vmem:[#allocation7 + $0x1b0] sm:$0xff]  ;;  %v1116_v2 = vpack.c.bf16 %v558_v61, %v554_v59  ;;  %v567_v5 = vld [vmem:[#allocation7 + $0x1e8] sm:$0xff]  ;;  %v565_v6 = vld [vmem:[#allocation7 + $0x1d8] sm:$0xff] }
  0x96   : > { %1101 = vmatpush1.bf16.msra.mxu0 %v1100_v14  ;;  %v1148_v3 = vpack.c.bf16 %v560_v0, %v556_v63  ;;  %v1118_v7 = vpack.c.bf16 %v567_v5, %v563_v4  ;;  %v569_v8 = vld [vmem:[#allocation7 + $0x1f8] sm:$0xff]  ;;  %v562_v9 = vld [vmem:[#allocation7 + $0x1c0] sm:$0xff]  ;;  %v564_v13 = vld [vmem:[#allocation7 + $0x1d0] sm:$0xff]  ;;  %v578_v43 = vsub.s32 1, %v573_v39  ;;  %v586_v44 = vsub.s32 3, %v573_v39 }
  0x97   : > { %1103 = vmatprep.subr.bf16.mxu0 %v1102_v16  ;;  %v566_v10 = vld [vmem:[#allocation7 + $0x1e0] sm:$0xff]  ;;  %v1150_v11 = vpack.c.bf16 %v569_v8, %v565_v6  ;;  %v568_v14 = vld [vmem:[#allocation7 + $0x1f0] sm:$0xff]  ;;  %v1425_v16 = vmov 0.0  }
  0x98   : > { %1133 = vmatpush1.bf16.msra.mxu1 %v1132_v15  ;;  %v1120_v12 = vpack.c.bf16 %v566_v10, %v562_v9  ;;  %v1152_v15 = vpack.c.bf16 %v568_v14, %v564_v13  ;;  %656 = vmatprep.mubr.f32.mxu0 %v1425_v16  ;;  %v931_v19 = vld [vmem:[%s1753_s2] ss:$0 sm:$0xff] }
  0x99   : > { %1135 = vmatprep.subr.bf16.mxu1 %v1134_v22  ;;  %733 = vmatprep.mubr.f32.mxu1 %v1425_v16 }
  0x9a   : > { %1105 = vmatpush1.bf16.msra.mxu0 %v1104_v28 }
  0x9b   : > { %1107 = vmatprep.subr.bf16.mxu0 %v1106_v30 }
  0x9c   : > { %1137 = vmatpush1.bf16.msra.mxu1 %v1136_v29 }
  0x9d   : > { %1139 = vmatprep.subr.bf16.mxu1 %v1138_v34 }
  0x9e   : > { %1109 = vmatpush1.bf16.msra.mxu0 %v1108_v40  ;;  %v574_v40 = vsub.s32 0, %v573_v39 }
  0x9f   : > { %1111 = vmatprep.subr.bf16.mxu0 %v1110_v42  ;;  %v570_v42 = vld [vmem:[%s1755_s4] sm:$0xf] }
  0xa0   : > { %1141 = vmatpush1.bf16.msra.mxu1 %v1140_v41  ;;  %v582_v41 = vsub.s32 2, %v573_v39  ;;  %v579_v48 = vrot.slane %v570_v42, %v578_v43 }
  0xa1   : > { %1143 = vmatprep.subr.bf16.mxu1 %v1142_v45  ;;  %v575_v45 = vrot.slane %v570_v42, %v574_v40 }
  0xa2   : > { %1113 = vmatpush1.bf16.msra.mxu0 %v1112_v52  ;;  %v583_v47 = vrot.slane %v570_v42, %v582_v41  ;;  %v587_v52 = vrot.slane %v570_v42, %v586_v44 }
  0xa3   : > { %1115 = vmatprep.subr.bf16.mxu0 %v1114_v57 }
  0xa4   : > { %1145 = vmatpush1.bf16.msra.mxu1 %v1144_v53 }
  0xa5   : > { %1147 = vmatprep.subr.bf16.mxu1 %v1146_v60 }
  0xa6   : > { %1117 = vmatpush1.bf16.msra.mxu0 %v1116_v2 }
  0xa7   : > { %1119 = vmatprep.subr.bf16.mxu0 %v1118_v7 }
  0xa8   : > { %1149 = vmatpush1.bf16.msra.mxu1 %v1148_v3 }
  0xa9   : > { %1151 = vmatprep.subr.bf16.mxu1 %v1150_v11 }
  0xaa   : > { %1121 = vmatpush1.bf16.msra.mxu0 %v1120_v12 }
  0xac   : > { %1153 = vmatpush1.bf16.msra.mxu1 %v1152_v15 }
 0x160   : > { %v982_v18 = vpop.f32.mrb[0].mxu0 }
 0x161   : > { %v983_v20 = vpop.f32.mrb[1].mxu0 }
 0x162   : > { %v1020_v22 = vpop.f32.mrb[0].mxu1  ;;  %v984_v23 = vadd.f32 %v983_v20, %v982_v18 }
 0x163   : > { %v1021_v24 = vpop.f32.mrb[1].mxu1 }
 0x164   : > { %v1022_v25 = vadd.f32 %v1021_v24, %v1020_v22  ;;  %v421_v26 = vadd.f32 %v984_v23, %v931_v19  ;;  %v985_v27 = vpop.f32.mrb[2].mxu0 }
 0x165   : > { %v986_v28 = vpop.f32.mrb[3].mxu0 }
 0x166   : > { %v1023_v29 = vpop.f32.mrb[2].mxu1  ;;  %v496_v30 = vadd.f32 %v1022_v25, %v421_v26  ;;  %v987_v31 = vadd.f32 %v986_v28, %v985_v27 }
 0x167   : > { %v1024_v32 = vpop.f32.mrb[3].mxu1 }
 0x168   : > { %v1025_v33 = vadd.f32 %v1024_v32, %v1023_v29  ;;  %v504_v34 = vmax.f32 %v496_v30, 0.0  ;;  %v426_v35 = vadd.f32 %v987_v31, %v931_v19 }
 0x16a   : > { %v501_v36 = vadd.f32 %v1025_v33, %v426_v35  ;;  %657 = vmatmul.mubr.f32.vlgmr.msra.gmra.mrb[4].mxu0 %v504_v34  ;;  %734 = vmatmul.mubr.f32.vlgmr.msra.gmra.mrb[4].mxu1 %v504_v34 }
 0x16b   : > { %662 = vmatprep.mubr.f32.mxu0 %v1425_v16  ;;  %739 = vmatprep.mubr.f32.mxu1 %v1425_v16 }
 0x16c   : > { %v505_v37 = vmax.f32 %v501_v36, 0.0 }
 0x16e   : > { %663 = vmatmul.mubr.f32.gmra.mrb[6].mxu0 %v505_v37  ;;  %740 = vmatmul.mubr.f32.gmra.mrb[6].mxu1 %v505_v37 }
 0x23d   : > { %v658_v53 = vpop.f32.mrb[4].mxu0  ;;  %v735_v54 = vpop.f32.mrb[4].mxu1 }
 0x23e   : > { %v659_v55 = vadd.f32 %v658_v53, %v575_v45  ;;  %v736_v56 = vadd.f32 %v735_v54, %v583_v47  ;;  %v660_v57 = vpop.f32.mrb[5].mxu0  ;;  %v737_v58 = vpop.f32.mrb[5].mxu1 }
 0x23f   : > { %v661_v59 = vadd.f32 %v660_v57, %v579_v48  ;;  %v738_v60 = vadd.f32 %v737_v58, %v587_v52 }
 0x240   : > { %v932_v61 = vmul.f32 -1.442695, %v659_v55  ;;  %v934_v63 = vmul.f32 -1.442695, %v736_v56 }
 0x241   : > { %v933_v0 = vmul.f32 -1.442695, %v661_v59  ;;  %v935_v2 = vmul.f32 -1.442695, %v738_v60  ;;  %v664_v3 = vpop.f32.mrb[6].mxu0  ;;  %v741_v4 = vpop.f32.mrb[6].mxu1 }
 0x242   : > { %1228 = vpow2.f32 %v932_v61  ;;  %v665_v5 = vadd.f32 %v664_v3, %v575_v45  ;;  %v742_v6 = vadd.f32 %v741_v4, %v583_v47  ;;  %v666_v7 = vpop.f32.mrb[7].mxu0  ;;  %v743_v8 = vpop.f32.mrb[7].mxu1 }
 0x243   : > { %1230 = vpow2.f32 %v934_v63  ;;  %v667_v9 = vadd.f32 %v666_v7, %v579_v48  ;;  %v744_v10 = vadd.f32 %v743_v8, %v587_v52 }
 0x244   : > { %1232 = vpow2.f32 %v933_v0  ;;  %v936_v11 = vmul.f32 -1.442695, %v665_v5  ;;  %v938_v12 = vmul.f32 -1.442695, %v742_v6 }
 0x245   : > { %1234 = vpow2.f32 %v935_v2  ;;  %v937_v13 = vmul.f32 -1.442695, %v667_v9  ;;  %v939_v14 = vmul.f32 -1.442695, %v744_v10 }
 0x246   : > { %1236 = vpow2.f32 %v936_v11 }
 0x247   : > { %1238 = vpow2.f32 %v938_v12 }
 0x248   : > { %1240 = vpow2.f32 %v937_v13 }
 0x249   : > { %1242 = vpow2.f32 %v939_v14 }
 0x24c   : > { %v1229_v15 = vpop.eup %1228 }
 0x24d   : > { %v1231_v16 = vpop.eup %1230  ;;  %v770_v18 = vadd.f32 1.0, %v1229_v15 }
 0x24e   : > { %v1233_v19 = vpop.eup %1232  ;;  %v772_v20 = vadd.f32 1.0, %v1231_v16 }
 0x24f   : > { %v1235_v22 = vpop.eup %1234  ;;  %1244 = vrcp.f32 %v770_v18  ;;  %v771_v23 = vadd.f32 1.0, %v1233_v19 }
 0x250   : > { %v1237_v24 = vpop.eup %1236  ;;  %1246 = vrcp.f32 %v772_v20  ;;  %v773_v25 = vadd.f32 1.0, %v1235_v22 }
 0x251   : > { %v1239_v26 = vpop.eup %1238  ;;  %1248 = vrcp.f32 %v771_v23  ;;  %v774_v27 = vadd.f32 1.0, %v1237_v24 }
 0x252   : > { %v1241_v28 = vpop.eup %1240  ;;  %1250 = vrcp.f32 %v773_v25  ;;  %v776_v29 = vadd.f32 1.0, %v1239_v26 }
 0x253   : > { %v1243_v30 = vpop.eup %1242  ;;  %1252 = vrcp.f32 %v774_v27  ;;  %v775_v31 = vadd.f32 1.0, %v1241_v28 }
 0x254   : > { %1254 = vrcp.f32 %v776_v29  ;;  %v777_v32 = vadd.f32 1.0, %v1243_v30 }
 0x255   : > { %1256 = vrcp.f32 %v775_v31 }
 0x256   : > { %1258 = vrcp.f32 %v777_v32 }
 0x259   : > { %v1245_v33 = vpop.eup %1244 }
 0x25a   : > { %v1247_v34 = vpop.eup %1246  ;;  %v794_v35 = vmul.f32 %v1245_v33, %v1662_v46 }
 0x25b   : > { %v1249_v36 = vpop.eup %1248  ;;  %v796_v37 = vmul.f32 %v1247_v34, %v1665_v49 }
 0x25c   : > { %v1251_v38 = vpop.eup %1250  ;;  %802 = vst [vmem:[%s272_s10] sm:$0xff] %v794_v35  ;;  %v795_v39 = vmul.f32 %v1249_v36, %v1654_v17 }
 0x25d   : > { %v1253_v40 = vpop.eup %1252  ;;  %804 = vst [vmem:[%s272_s10 + $0x10] sm:$0xff] %v796_v37  ;;  %v797_v41 = vmul.f32 %v1251_v38, %v1658_v21 }
 0x25e   : > { %v1255_v42 = vpop.eup %1254  ;;  %803 = vst [vmem:[%s272_s10 + $0x8] sm:$0xff] %v795_v39  ;;  %v798_v46 = vmul.f32 %v1253_v40, %v1677_v62 }
 0x25f   : > { %v1257_v43 = vpop.eup %1256  ;;  %805 = vst [vmem:[%s272_s10 + $0x18] sm:$0xff] %v797_v41  ;;  %v800_v49 = vmul.f32 %v1255_v42, %v1681_v1 }
 0x260   : > { %v1259_v44 = vpop.eup %1258  ;;  %806 = vst [vmem:[%s272_s10 + $0x20] sm:$0xff] %v798_v46  ;;  %v799_v17 = vmul.f32 %v1257_v43, %v1668_v50 }
 0x261   : > { %808 = vst [vmem:[%s272_s10 + $0x30] sm:$0xff] %v800_v49  ;;  %v801_v21 = vmul.f32 %v1259_v44, %v1671_v51 }
 0x262   : > { %807 = vst [vmem:[%s272_s10 + $0x28] sm:$0xff] %v799_v17 }
 0x263   : > { %809 = vst [vmem:[%s272_s10 + $0x38] sm:$0xff] %v801_v21 }
 0x264   : > { %1359 = shalt.err (!%p1356_p2)
}
 0x265   : > { %s1360_s14 = scalar_lea.hbm %s1704_s11, 1024  ;;  %s1364_s12 = scalar_lea.hbm %s1756_s5, 2048 }
 0x266   : > { %p1361_p13 = scmp.ne.s32.totalorder %s1704_s11, %s1360_s14  ;;  %p1365_p4 = scmp.lt.u32.totalorder %s1704_s11, %s1756_s5 }
 0x267   : > { %p1366_p7 = scmp.lt.u32.totalorder %s1364_s12, %s1360_s14  ;;  %p1368_p11 = scmp.lt.u32.totalorder %s1360_s14, %s1704_s11 }
 0x268   : > { %p1362_p6 = pnand %p1361_p13, %p1770_p0 }
 0x269   : > { %p1367_p8 = por %p1366_p7, %p1365_p4 }
 0x26a   : > { %p1363_p10 = pneg %p1362_p6 }
 0x26b   : > { %p1369_p1 = por %p1368_p11, %p1367_p8 }
 0x26d   : > { %p1370_p3 = pnand %p1369_p1, %p1363_p10 }
 0x26f   : > { %1373 = shalt.err (!%p1370_p3)
}
 0x270   : > { %s1427_s28 = smov 512   ;;  %s1428_s9 = smov 32  }
 0x271   : > { %1164 = dma.vmem_to_hbm [thread:$0]  (%p1770_p0), %s1706_s15, 1024, %s1704_s11, %s811_s22, %s1427_s28, %s1427_s28, %s1428_s9  }
 0x272 PF: > { %s840_s30 = sand.u32 1, %s1404_s18   ;;  %p1771_p5 = scmp.ne.s32.totalorder %s1761_s25, 0 }
 0x273   : > { %p1772_p9 = scmp.ge.s32.totalorder %s1416_s21, 2  ;;  %s841_s23 = scalar_lea.sflag [#allocation4], %s840_s30 }
 0x275   : > { %p1178_p12 = pnand %p1772_p9, %p1771_p5 }
 0x277   : > { %1399 = dma.done.wait (!%p1178_p12), %s841_s23, 1024  }
 0x278   : > { %1401 = vsyncadd (!%p1178_p12), %s841_s23, 4294966272  ;;  %p19_p2 = scmp.ge.s32.totalorder %s1572_s16, 4   ;;  %s1773_s18 = smov %s1408_s19 }
 0x279   : > { %s1774_s19 = smov %s1412_s20  ;;  %s1775_s20 = smov %s1581_s27 }
 0x27a   : > { %s1776_s21 = smov %s1572_s16  ;;  %21 = sbr.rel (!%p19_p2) target bundleno = 6 (0x6), region = 93 }
 0x281   :  { %846 = vsyncpa [#allocation3], 1 }
 0x282   :  { %848 = vsyncpa [#allocation3 + $0x1], 1 }
 0x283   :  { %849 = vsyncpa [#allocation6], 1 }
 0x284   :  { %850 = vsyncpa [#allocation4], 1 }
 0x285   :  { %852 = vsyncpa [#allocation4 + $0x1], 1 }

</bundles_post_ra>
